<compile_context>
chip_gen: v7x
topology: tpu7x:2x2x1
jax: 0.10.0
libtpu: 0.0.40
codegen_flags: <defaults>
</compile_context>

<pallas_src>
import jax
import jax.numpy as jnp
from jax.experimental import pallas as pl
from jax.experimental.pallas import tpu as pltpu

LEAKY_SLOPE = 0.01


def _round_up(n, m):
    return ((n + m - 1) // m) * m


def mlp_kernel(x_ref, w_ref, b_ref, out_ref):
    """One batch tile through the whole 6-layer MLP.

    x_ref   : (tb, d_in)    bf16 (or f32)  activation tile, streamed per step
    w_ref   : (L, P, P)     bf16           all layer weights, zero-padded, resident
    b_ref   : (L, 1, P)     f32            all layer biases, zero-padded, resident
    out_ref : (tb, out_dim) bf16           trimmed output tile (masked store)
    """
    n_layers = w_ref.shape[0]
    d_in = x_ref.shape[1]
    out_dim = out_ref.shape[1]

    h = x_ref[...].astype(jnp.bfloat16)               # bf16 between layers
    for i in range(n_layers):                         # static unroll (6 layers)
        # Layer 0 only needs the first d_in (meaningful) weight rows; the rest
        # of the slab is zero padding, so slicing keeps K = d_in on the MXU and
        # avoids padding the activation tile out to 128 lanes in vregs.
        w = w_ref[i, :d_in, :] if i == 0 else w_ref[i]
        y = jnp.dot(h, w, preferred_element_type=jnp.float32) + b_ref[i]
        if i < n_layers - 1:
            y = jnp.maximum(y, LEAKY_SLOPE * y)       # LeakyReLU(0.01), f32
            h = y.astype(jnp.bfloat16)
        else:
            # Only the first out_dim lanes are meaningful; store them trimmed.
            out_ref[...] = y[:, :out_dim].astype(out_ref.dtype)


def review_embedder_forward(x, w_slab, b_slab, out_dim, *, tb=2048,
                            out_dtype=jnp.bfloat16):
    """x: (B, d_in), any float dtype (bf16 preferred: halves streamed bytes).
    w_slab: (L, P, P) bf16 zero-padded weights stored as (in, out).
    b_slab: (L, 1, P) f32 zero-padded biases.
    Returns (B, out_dim) out_dtype."""
    B, d_in = x.shape
    L, P, _ = w_slab.shape
    assert d_in <= P and out_dim <= P

    # Tile size: multiple of 8 (sublane constraint), no larger than needed, and
    # shrunk so the grid has >= 2 steps when B allows it so that on v7x both
    # TensorCores get work under "parallel" semantics.
    half = _round_up(pl.cdiv(max(B, 2), 2), 8)
    tb = max(8, _round_up(min(tb, half), 8))
    grid = (pl.cdiv(B, tb),)
    # B need not be a multiple of tb: Pallas clips the ragged last block on
    # writeback, and out-of-bounds input rows only feed rows never stored.

    return pl.pallas_call(
        mlp_kernel,
        grid=grid,
        in_specs=[
            # Stream unpadded batch tiles (last dim == full array dim -> legal).
            pl.BlockSpec((tb, d_in), lambda i: (i, 0)),
            # Weights / biases: constant index_map -> VMEM-resident, no re-DMA.
            pl.BlockSpec((L, P, P), lambda i: (0, 0, 0)),
            pl.BlockSpec((L, 1, P), lambda i: (0, 0, 0)),
        ],
        out_specs=pl.BlockSpec((tb, out_dim), lambda i: (i, 0)),
        out_shape=jax.ShapeDtypeStruct((B, out_dim), out_dtype),
        compiler_params=pltpu.CompilerParams(
            # Independent batch tiles -> shard the grid across TensorCores.
            dimension_semantics=("parallel",),
            # VMEM: ~200 KiB resident slabs + 2x double-buffered bf16
            # (tb, d_in)/(tb, out_dim) tiles -- well under even v5e's 16 MiB
            # scoped default at tb=2048, so no explicit vmem_limit_bytes.
        ),
    )(x, w_slab, b_slab)


def init_params(key, layer_dims, lane=128):
    """Xavier-uniform weights / zero biases (matches init.xavier_uniform_ and
    bias.fill_(0)), packed into zero-padded lane-dense slabs:
        w_slab: (L, P, P) bf16, layer i stored as (in, out) at [:in_i, :out_i]
        b_slab: (L, 1, P) f32
    Also returns the unpadded f32 weights/biases for the reference check."""
    n_layers = len(layer_dims) - 1
    P = _round_up(max(layer_dims), lane)
    w_slab = jnp.zeros((n_layers, P, P), jnp.float32)
    b_slab = jnp.zeros((n_layers, 1, P), jnp.float32)      # biases are zero-init
    weights, biases = [], []
    for li, (fan_in, fan_out) in enumerate(zip(layer_dims[:-1], layer_dims[1:])):
        key, sub = jax.random.split(key)
        bound = float(jnp.sqrt(6.0 / (fan_in + fan_out)))
        w = jax.random.uniform(sub, (fan_in, fan_out), jnp.float32,
                               minval=-bound, maxval=bound)
        weights.append(w)
        biases.append(jnp.zeros((fan_out,), jnp.float32))
        w_slab = w_slab.at[li, :fan_in, :fan_out].set(w)
    return w_slab.astype(jnp.bfloat16), b_slab, weights, biases


def reference_forward_bf16(x, weights, biases):
    """Same arithmetic as the kernel: bf16 matmul inputs + bf16 inter-layer
    carry, f32 accumulation / bias / LeakyReLU, bf16 output."""
    h = x.astype(jnp.bfloat16)
    n = len(weights)
    for i, (w, b) in enumerate(zip(weights, biases)):
        y = jnp.dot(h, w.astype(jnp.bfloat16),
                    preferred_element_type=jnp.float32) + b
        if i < n - 1:
            y = jnp.maximum(y, LEAKY_SLOPE * y)
            h = y.astype(jnp.bfloat16)
        else:
            return y.astype(jnp.bfloat16)


def reference_forward_f32(x, weights, biases):
    h = x.astype(jnp.float32)
    n = len(weights)
    for i, (w, b) in enumerate(zip(weights, biases)):
        h = h @ w + b
        if i < n - 1:
            h = jnp.maximum(h, LEAKY_SLOPE * h)
    return h


if __name__ == "__main__":
    # ReviewEmbedder hyperparameters (small, TPU-friendly demo shapes).
    batch = 16
    input_dim = 32
    mlp_1 = 64
    mlp_2 = 64
    hidden_dim = 32
    output_dim = 16
    # self.mlp dims: input -> mlp_1 -> mlp_2 -> hidden -> hidden -> hidden -> output
    layer_dims = [input_dim, mlp_1, mlp_2, hidden_dim,
                  hidden_dim, hidden_dim, output_dim]

    key = jax.random.PRNGKey(0)
    key, xkey = jax.random.split(key)
    x_f32 = jax.random.normal(xkey, (batch, input_dim), jnp.float32)
    # Recommended streaming dtype is bf16 (callers holding bf16 activations
    # avoid any cast); the kernel also accepts f32 x and casts in-kernel.
    x = x_f32.astype(jnp.bfloat16)

    w_slab, b_slab, weights, biases = init_params(key, layer_dims)

    # Default tb=2048 gets clamped to a multiple of 8 and split so the demo
    # still runs a 2-step grid (B=16 -> tb=8, grid=(2,)).
    out = review_embedder_forward(x, w_slab, b_slab, output_dim)
    out = jax.block_until_ready(out)

    assert out.shape == (batch, output_dim)
    assert out.dtype == jnp.bfloat16

    # Exact-arithmetic reference (bf16 matmuls + bf16 carry, f32 accumulate).
    ref_bf16 = reference_forward_bf16(x, weights, biases)
    assert jnp.allclose(out.astype(jnp.float32), ref_bf16.astype(jnp.float32),
                        atol=1e-2, rtol=1e-2)
    # Full-f32 semantic reference, loose tolerance (bf16 streaming/carry).
    ref_f32 = reference_forward_f32(x_f32, weights, biases)
    assert jnp.allclose(out.astype(jnp.float32), ref_f32, atol=1e-1, rtol=1e-1)

    print("KERNEL_OK")
</pallas_src>

<mosaic_0001>
module attributes {stable_mosaic.version = 11 : i64} {
  func.func @mlp_kernel(%arg0: i32, %arg1: memref<8x32xbf16, #tpu.memory_space<vmem>>, %arg2: memref<6x128x128xbf16, #tpu.memory_space<vmem>>, %arg3: memref<6x1x128xf32, #tpu.memory_space<vmem>>, %arg4: memref<8x16xbf16, #tpu.memory_space<vmem>>) attributes {dimension_semantics = [#tpu.dimension_semantics<parallel>], iteration_bounds = array<i64: 2>, scalar_prefetch = 0 : i64, scratch_operands = 0 : i64, tpu.core_type = #tpu.core_type<tc>, window_params = [{transform_indices = @transform_0, window_bounds = array<i64: 8, 32>}, {pipeline_mode = #tpu.pipeline_mode<synchronous>, transform_indices = @transform_1, window_bounds = array<i64: 6, 128, 128>}, {pipeline_mode = #tpu.pipeline_mode<synchronous>, transform_indices = @transform_2, window_bounds = array<i64: 6, 1, 128>}, {transform_indices = @transform_3, window_bounds = array<i64: 8, 16>}]} {
    %c0 = arith.constant 0 : index
    %c0_0 = arith.constant 0 : index
    %0 = vector.load %arg1[%c0, %c0_0] : memref<8x32xbf16, #tpu.memory_space<vmem>>, vector<8x32xbf16>
    %c0_1 = arith.constant 0 : index
    %c0_2 = arith.constant 0 : index
    %c0_3 = arith.constant 0 : index
    %1 = vector.load %arg2[%c0_1, %c0_2, %c0_3] : memref<6x128x128xbf16, #tpu.memory_space<vmem>>, vector<1x32x128xbf16>
    %2 = vector.shape_cast %1 : vector<1x32x128xbf16> to vector<32x128xbf16>
    %cst = arith.constant dense<0.000000e+00> : vector<8x128xf32>
    %3 = tpu.matmul %0, %2, %cst {dimension_numbers = #tpu.dot_dimension_numbers<[1], [0], [0], [1], [0, 0, 1, 1], [], []>} : vector<8x32xbf16>, vector<32x128xbf16>, vector<8x128xf32> -> vector<8x128xf32>
    %c0_4 = arith.constant 0 : index
    %c0_5 = arith.constant 0 : index
    %c0_6 = arith.constant 0 : index
    %4 = vector.load %arg3[%c0_4, %c0_5, %c0_6] : memref<6x1x128xf32, #tpu.memory_space<vmem>>, vector<1x1x128xf32>
    %5 = vector.shape_cast %4 : vector<1x1x128xf32> to vector<1x128xf32>
    %6 = vector.broadcast %5 : vector<1x128xf32> to vector<8x128xf32>
    %7 = arith.addf %3, %6 : vector<8x128xf32>
    %cst_7 = arith.constant 0.00999999977 : f32
    %8 = vector.broadcast %cst_7 : f32 to vector<8x128xf32>
    %9 = arith.mulf %8, %7 : vector<8x128xf32>
    %10 = arith.maximumf %7, %9 : vector<8x128xf32>
    %11 = arith.truncf %10 : vector<8x128xf32> to vector<8x128xbf16>
    %c1 = arith.constant 1 : index
    %c0_8 = arith.constant 0 : index
    %c0_9 = arith.constant 0 : index
    %12 = vector.load %arg2[%c1, %c0_8, %c0_9] : memref<6x128x128xbf16, #tpu.memory_space<vmem>>, vector<1x128x128xbf16>
    %13 = vector.shape_cast %12 : vector<1x128x128xbf16> to vector<128x128xbf16>
    %cst_10 = arith.constant dense<0.000000e+00> : vector<8x128xf32>
    %14 = tpu.matmul %11, %13, %cst_10 {dimension_numbers = #tpu.dot_dimension_numbers<[1], [0], [0], [1], [0, 0, 1, 1], [], []>} : vector<8x128xbf16>, vector<128x128xbf16>, vector<8x128xf32> -> vector<8x128xf32>
    %c1_11 = arith.constant 1 : index
    %c0_12 = arith.constant 0 : index
    %c0_13 = arith.constant 0 : index
    %15 = vector.load %arg3[%c1_11, %c0_12, %c0_13] : memref<6x1x128xf32, #tpu.memory_space<vmem>>, vector<1x1x128xf32>
    %16 = vector.shape_cast %15 : vector<1x1x128xf32> to vector<1x128xf32>
    %17 = vector.broadcast %16 : vector<1x128xf32> to vector<8x128xf32>
    %18 = arith.addf %14, %17 : vector<8x128xf32>
    %cst_14 = arith.constant 0.00999999977 : f32
    %19 = vector.broadcast %cst_14 : f32 to vector<8x128xf32>
    %20 = arith.mulf %19, %18 : vector<8x128xf32>
    %21 = arith.maximumf %18, %20 : vector<8x128xf32>
    %22 = arith.truncf %21 : vector<8x128xf32> to vector<8x128xbf16>
    %c2 = arith.constant 2 : index
    %c0_15 = arith.constant 0 : index
    %c0_16 = arith.constant 0 : index
    %23 = vector.load %arg2[%c2, %c0_15, %c0_16] : memref<6x128x128xbf16, #tpu.memory_space<vmem>>, vector<1x128x128xbf16>
    %24 = vector.shape_cast %23 : vector<1x128x128xbf16> to vector<128x128xbf16>
    %cst_17 = arith.constant dense<0.000000e+00> : vector<8x128xf32>
    %25 = tpu.matmul %22, %24, %cst_17 {dimension_numbers = #tpu.dot_dimension_numbers<[1], [0], [0], [1], [0, 0, 1, 1], [], []>} : vector<8x128xbf16>, vector<128x128xbf16>, vector<8x128xf32> -> vector<8x128xf32>
    %c2_18 = arith.constant 2 : index
    %c0_19 = arith.constant 0 : index
    %c0_20 = arith.constant 0 : index
    %26 = vector.load %arg3[%c2_18, %c0_19, %c0_20] : memref<6x1x128xf32, #tpu.memory_space<vmem>>, vector<1x1x128xf32>
    %27 = vector.shape_cast %26 : vector<1x1x128xf32> to vector<1x128xf32>
    %28 = vector.broadcast %27 : vector<1x128xf32> to vector<8x128xf32>
    %29 = arith.addf %25, %28 : vector<8x128xf32>
    %cst_21 = arith.constant 0.00999999977 : f32
    %30 = vector.broadcast %cst_21 : f32 to vector<8x128xf32>
    %31 = arith.mulf %30, %29 : vector<8x128xf32>
    %32 = arith.maximumf %29, %31 : vector<8x128xf32>
    %33 = arith.truncf %32 : vector<8x128xf32> to vector<8x128xbf16>
    %c3 = arith.constant 3 : index
    %c0_22 = arith.constant 0 : index
    %c0_23 = arith.constant 0 : index
    %34 = vector.load %arg2[%c3, %c0_22, %c0_23] : memref<6x128x128xbf16, #tpu.memory_space<vmem>>, vector<1x128x128xbf16>
    %35 = vector.shape_cast %34 : vector<1x128x128xbf16> to vector<128x128xbf16>
    %cst_24 = arith.constant dense<0.000000e+00> : vector<8x128xf32>
    %36 = tpu.matmul %33, %35, %cst_24 {dimension_numbers = #tpu.dot_dimension_numbers<[1], [0], [0], [1], [0, 0, 1, 1], [], []>} : vector<8x128xbf16>, vector<128x128xbf16>, vector<8x128xf32> -> vector<8x128xf32>
    %c3_25 = arith.constant 3 : index
    %c0_26 = arith.constant 0 : index
    %c0_27 = arith.constant 0 : index
    %37 = vector.load %arg3[%c3_25, %c0_26, %c0_27] : memref<6x1x128xf32, #tpu.memory_space<vmem>>, vector<1x1x128xf32>
    %38 = vector.shape_cast %37 : vector<1x1x128xf32> to vector<1x128xf32>
    %39 = vector.broadcast %38 : vector<1x128xf32> to vector<8x128xf32>
    %40 = arith.addf %36, %39 : vector<8x128xf32>
    %cst_28 = arith.constant 0.00999999977 : f32
    %41 = vector.broadcast %cst_28 : f32 to vector<8x128xf32>
    %42 = arith.mulf %41, %40 : vector<8x128xf32>
    %43 = arith.maximumf %40, %42 : vector<8x128xf32>
    %44 = arith.truncf %43 : vector<8x128xf32> to vector<8x128xbf16>
    %c4 = arith.constant 4 : index
    %c0_29 = arith.constant 0 : index
    %c0_30 = arith.constant 0 : index
    %45 = vector.load %arg2[%c4, %c0_29, %c0_30] : memref<6x128x128xbf16, #tpu.memory_space<vmem>>, vector<1x128x128xbf16>
    %46 = vector.shape_cast %45 : vector<1x128x128xbf16> to vector<128x128xbf16>
    %cst_31 = arith.constant dense<0.000000e+00> : vector<8x128xf32>
    %47 = tpu.matmul %44, %46, %cst_31 {dimension_numbers = #tpu.dot_dimension_numbers<[1], [0], [0], [1], [0, 0, 1, 1], [], []>} : vector<8x128xbf16>, vector<128x128xbf16>, vector<8x128xf32> -> vector<8x128xf32>
    %c4_32 = arith.constant 4 : index
    %c0_33 = arith.constant 0 : index
    %c0_34 = arith.constant 0 : index
    %48 = vector.load %arg3[%c4_32, %c0_33, %c0_34] : memref<6x1x128xf32, #tpu.memory_space<vmem>>, vector<1x1x128xf32>
    %49 = vector.shape_cast %48 : vector<1x1x128xf32> to vector<1x128xf32>
    %50 = vector.broadcast %49 : vector<1x128xf32> to vector<8x128xf32>
    %51 = arith.addf %47, %50 : vector<8x128xf32>
    %cst_35 = arith.constant 0.00999999977 : f32
    %52 = vector.broadcast %cst_35 : f32 to vector<8x128xf32>
    %53 = arith.mulf %52, %51 : vector<8x128xf32>
    %54 = arith.maximumf %51, %53 : vector<8x128xf32>
    %55 = arith.truncf %54 : vector<8x128xf32> to vector<8x128xbf16>
    %c5 = arith.constant 5 : index
    %c0_36 = arith.constant 0 : index
    %c0_37 = arith.constant 0 : index
    %56 = vector.load %arg2[%c5, %c0_36, %c0_37] : memref<6x128x128xbf16, #tpu.memory_space<vmem>>, vector<1x128x128xbf16>
    %57 = vector.shape_cast %56 : vector<1x128x128xbf16> to vector<128x128xbf16>
    %cst_38 = arith.constant dense<0.000000e+00> : vector<8x128xf32>
    %58 = tpu.matmul %55, %57, %cst_38 {dimension_numbers = #tpu.dot_dimension_numbers<[1], [0], [0], [1], [0, 0, 1, 1], [], []>} : vector<8x128xbf16>, vector<128x128xbf16>, vector<8x128xf32> -> vector<8x128xf32>
    %c5_39 = arith.constant 5 : index
    %c0_40 = arith.constant 0 : index
    %c0_41 = arith.constant 0 : index
    %59 = vector.load %arg3[%c5_39, %c0_40, %c0_41] : memref<6x1x128xf32, #tpu.memory_space<vmem>>, vector<1x1x128xf32>
    %60 = vector.shape_cast %59 : vector<1x1x128xf32> to vector<1x128xf32>
    %61 = vector.broadcast %60 : vector<1x128xf32> to vector<8x128xf32>
    %62 = arith.addf %58, %61 : vector<8x128xf32>
    %63 = vector.extract_strided_slice %62 {offsets = [0, 0], sizes = [8, 16], strides = [1, 1]} : vector<8x128xf32> to vector<8x16xf32>
    %64 = arith.truncf %63 : vector<8x16xf32> to vector<8x16xbf16>
    %c0_42 = arith.constant 0 : index
    %c0_43 = arith.constant 0 : index
    %65 = vector.load %arg4[%c0_42, %c0_43] : memref<8x16xbf16, #tpu.memory_space<vmem>>, vector<8x16xbf16>
    tpu.vector_store %arg4[%c0_42, %c0_43], %64 {strides = array<i32>} : memref<8x16xbf16, #tpu.memory_space<vmem>>, vector<8x16xbf16>,
    return
  }
  func.func @transform_0(%arg0: i32) -> (i32, i32) {
    %c0_i32 = arith.constant 0 : i32
    %c0_i32_0 = arith.constant 0 : i32
    return %arg0, %c0_i32 : i32, i32
  }
  func.func @transform_1(%arg0: i32) -> (i32, i32, i32) {
    %c0_i32 = arith.constant 0 : i32
    %c0_i32_0 = arith.constant 0 : i32
    %c0_i32_1 = arith.constant 0 : i32
    %c0_i32_2 = arith.constant 0 : i32
    return %c0_i32, %c0_i32_0, %c0_i32_1 : i32, i32, i32
  }
  func.func @transform_2(%arg0: i32) -> (i32, i32, i32) {
    %c0_i32 = arith.constant 0 : i32
    %c0_i32_0 = arith.constant 0 : i32
    %c0_i32_1 = arith.constant 0 : i32
    %c0_i32_2 = arith.constant 0 : i32
    return %c0_i32, %c0_i32_0, %c0_i32_1 : i32, i32, i32
  }
  func.func @transform_3(%arg0: i32) -> (i32, i32) {
    %c0_i32 = arith.constant 0 : i32
    %c0_i32_0 = arith.constant 0 : i32
    return %arg0, %c0_i32 : i32, i32
  }
}

</mosaic_0001>

<bundles_post_ra>
// kernel: tpu_custom_call.1
= control target key start
LH: loop header
LB: loop body
LE: loop exit
PB: predicated region body
PF: predicated region fallthrough
CT: control target
= control target key end

     0   :  { %8 = vsyncpa [#allocation3], 0  ;;  %s1703_s0 = inlined_call_operand.hbm [shape: bf16[16,32], index: 0, kind: input, shape index: {}]   ;;  %s1704_s1 = inlined_call_operand.hbm [shape: bf16[6,128,128], index: 1, kind: input, shape index: {}]   ;;  %s1705_s2 = inlined_call_operand.vmem [shape: f32[6,1,128], index: 2, kind: input, shape index: {}]   ;;  %s1706_s3 = inlined_call_operand.hbm [shape: bf16[16,16], index: 3, kind: output, shape index: {}]  }
   0x1   :  { %10 = vsyncpa [#allocation3 + $0x1], 0 }
   0x2   :  { %11 = vsyncpa [#allocation6], 0 }
   0x3   :  { %12 = vsyncpa [#allocation4], 0 }
   0x4   :  { %14 = vsyncpa [#allocation4 + $0x1], 0  ;;  %s1431_s12 = smov 0   ;;  %s1433_s13 = smov 0  }
   0x5   :  { %s1435_s14 = smov 0   ;;  %s1437_s15 = smov 0  }
   0x6 LB: > { %s1452_s16 = sadd.s32 4294967295, %s1402_s15   ;;  %s947_s17 = sadd.s32 4294967294, %s1402_s15   ;;  %s1402_s15 = sphi %s1437_s15, %s1726_s15   ;;  %s1398_s14 = sphi %s1435_s14, %s1725_s14   ;;  %s1394_s13 = sphi %s1433_s13, %s1724_s13   ;;  %s1390_s12 = sphi %s1431_s12, %s1723_s12  }
   0x7   : > { %p40_p0 = scmp.ne.s32.totalorder %s1394_s13, %s1390_s12  ;;  %p1707_p1 = scmp.eq.s32.totalorder %s1452_s16, 0 }
   0x8   : > { %p112_p3 = scmp.eq.s32.totalorder %s947_s17, 1  ;;  %p948_p5 = scmp.ge.s32.totalorder %s1402_s15, 1 }
   0x9   : > { %p1461_p4 = por %p1707_p1, %p40_p0  ;;  %p119_p7 = scmp.lt.s32.totalorder %s1402_s15, 3 }
   0xa   : > { %p1466_p6 = por %p112_p3, %p40_p0  ;;  %s1404_s21 = smov [#allocation5]  }
   0xb   : > { %s1710_s18 = scalar_select %p1461_p4, 1, 0 }
   0xc   : > { %s1711_s19 = scalar_select %p1466_p6, 1, 0 }
   0xd   : > { %p1471_p8 = pnand %p948_p5, %p119_p7  ;;  %s131_s22 = sshll.u32 %s1404_s21, 4  ;;  %s1475_s22 = int_to_ptr.vmem [resolvable:$true] %s131_s22 }
   0xe   : > { %s1487_s24 = sadd.s32 1, %s1402_s15   ;;  %s27_s25 = sadd.s32 1, %s1398_s14 }
   0xf   : > { %s1712_s20 = scalar_select %p1471_p8, 1, 0 }
  0x10   : > { %p1179_p9 = pneg %p1471_p8  ;;  %s24_s26 = ssub.s32 %s1402_s15, %s1487_s24 }
  0x11   : > { %s1274_s29 = scalar_lea.hbm %s1704_s1, 6144 }
  0x12   : > { %p1482_p11 = pnand %p1179_p9, %p1707_p1  ;;  %p1275_p12 = scmp.ne.s32.totalorder %s1704_s1, %s1274_s29 }
  0x13   : > { %p1281_p5 = scmp.lt.u32.totalorder %s1274_s29, %s1704_s1 }
  0x14   : > { %p1276_p13 = pneg %p1482_p11 }
  0x16   : > { %p1277_p0 = pnand %p1276_p13, %p1275_p12 }
  0x18   : > { %p1278_p3 = pneg %p1277_p0 }
  0x1a   : > { %p1283_p7 = pnand %p1281_p5, %p1278_p3 }
  0x1c   : > { %1286 = shalt.err (!%p1283_p7)
}
  0x1d   : > { %s1287_s7 = scalar_lea.vmem %s1475_s22, 6144  ;;  %p1295_p2 = scmp.lt.s32.totalorder %s1475_s22, %s1475_s22 }
  0x1e   : > { %p1288_p9 = scmp.ne.s32.totalorder %s1475_s22, %s1287_s7  ;;  %p1296_p6 = scmp.lt.s32.totalorder %s1287_s7, %s1287_s7 }
  0x20   : > { %p1290_p10 = pnand %p1288_p9, %p1276_p13  ;;  %p1297_p4 = por %p1296_p6, %p1295_p2 }
  0x22   : > { %p1291_p1 = pneg %p1290_p10 }
  0x24   : > { %p1298_p8 = pnand %p1297_p4, %p1291_p1 }
  0x26   : > { %1301 = shalt.err (!%p1298_p8)
}
  0x27   : > { %s1405_s8 = smov 64   ;;  %s1406_s9 = smov 4  }
  0x28   : > { %1182 = dma.hbm_to_vmem [thread:$0]  (!%p1482_p11), %s1704_s1, 6144, %s1475_s22, [#allocation6], %s1405_s8, %s1405_s8, %s1406_s9  }
  0x29   : > { %p25_p2 = scmp.eq.s32.totalorder %s24_s26, 0  ;;  %p34_p1 = scmp.ne.s32.totalorder %s1398_s14, %s1394_s13 }
  0x2a   : > { %p35_p4 = scmp.eq.s32.totalorder %s1402_s15, 0  ;;  %p1192_p6 = scmp.lt.s32.totalorder %s1402_s15, 2 }
  0x2b   : > { %s1518_s17 = scalar_select %p25_p2, %s1398_s14, %s27_s25  }
  0x2c   : > { %p36_p8 = por %p35_p4, %p34_p1  ;;  %p1714_p10 = scmp.eq.s32.totalorder %s1452_s16, 1 }
  0x2d   : > { %s148_s27 = sand.u32 1, %s1398_s14   ;;  %s952_s28 = sshll.u32 %s1402_s15, 6 }
  0x2e   : > { %p1522_p12 = por %p1714_p10, %p34_p1  ;;  %s951_s29 = sshll.u32 %s148_s27, 2 }
  0x2f   : > { %s1531_s4 = scalar_lea.hbm %s1703_s0, %s952_s28  ;;  %s152_s22 = scalar_lea.vmem [#allocation2], %s951_s29 }
  0x30   : > { %s159_s25 = sshll.u32 %s152_s22, 4  ;;  %p1533_p11 = pnand %p1192_p6, %p36_p8  ;;  %s1537_s25 = int_to_ptr.vmem [resolvable:$true] %s159_s25 }
  0x31   : > { %s149_s5 = scalar_lea.sflag [#allocation3], %s148_s27  ;;  %s1302_s6 = scalar_lea.hbm %s1531_s4, 64 }
  0x32   : > { %p1303_p13 = scmp.ne.s32.totalorder %s1531_s4, %s1302_s6  ;;  %p1304_p0 = pneg %p1533_p11 }
  0x33   : > { %s1307_s9 = scalar_lea.hbm %s1703_s0, 128  ;;  %p1308_p7 = scmp.lt.u32.totalorder %s1531_s4, %s1703_s0 }
  0x34   : > { %p1305_p3 = pnand %p1304_p0, %p1303_p13  ;;  %p1309_p9 = scmp.lt.u32.totalorder %s1307_s9, %s1302_s6 }
  0x35   : > { %p1311_p1 = scmp.lt.u32.totalorder %s1302_s6, %s1531_s4 }
  0x36   : > { %p1306_p5 = pneg %p1305_p3  ;;  %p1310_p2 = por %p1309_p9, %p1308_p7 }
  0x38   : > { %p1312_p4 = por %p1311_p1, %p1310_p2 }
  0x3a   : > { %p1313_p6 = pnand %p1312_p4, %p1306_p5 }
  0x3c   : > { %1316 = shalt.err (!%p1313_p6)
}
  0x3d   : > { %s1317_s27 = scalar_lea.vmem %s1537_s25, 64  ;;  %s1407_s28 = smov [#allocation2]  }
  0x3e   : > { %p1318_p8 = scmp.ne.s32.totalorder %s1537_s25, %s1317_s27  ;;  %s1322_s29 = sshll.u32 %s1407_s28, 4  ;;  %s1323_s29 = int_to_ptr.vmem [resolvable:$false] %s1322_s29 }
  0x3f   : > { %s1324_s23 = scalar_lea.vmem %s1323_s29, 128  ;;  %p1325_p3 = scmp.lt.s32.totalorder %s1537_s25, %s1323_s29 }
  0x40   : > { %p1320_p10 = pnand %p1318_p8, %p1304_p0  ;;  %p1326_p7 = scmp.lt.s32.totalorder %s1324_s23, %s1317_s27 }
  0x42   : > { %p1321_p13 = pneg %p1320_p10  ;;  %p1327_p9 = por %p1326_p7, %p1325_p3 }
  0x44   : > { %p1328_p2 = pnand %p1327_p9, %p1321_p13 }
  0x46   : > { %1331 = shalt.err (!%p1328_p2)
}
  0x47   : > { %1186 = dma.hbm_to_vmem [thread:$0]  (!%p1533_p11), %s1531_s4, 64, %s1537_s25, %s149_s5  }
  0x48   : > { %p1717_p5 = scmp.ne.s32.totalorder %s1712_s20, 0 }
  0x49   : > { %s1567_s30 = sand.u32 (!%p1717_p5), 1, %s1394_s13   ;;  %p1718_p0 = scmp.ne.s32.totalorder (!%p1717_p5), %s1710_s18, 0 }
  0x4a   : > { %168 = sbr.rel (%p1717_p5) target bundleno = 1425 (0x591), region = 32  ;;  %s954_s22 = sshll.u32 (!%p1717_p5), %s1567_s30, 2 }
  0x4b   : > { %s171_s6 = scalar_lea.sflag (!%p1717_p5), [#allocation3], %s1567_s30  ;;  %s174_s7 = scalar_lea.vmem (!%p1717_p5), [#allocation2], %s954_s22 }
  0x51   : > { %1377 = dma.done.wait (%p1718_p0), %s171_s6, 64  }
  0x52   : > { %1379 = vsyncadd (%p1718_p0), %s171_s6, 4294967232  ;;  %p1719_p11 = scmp.eq.s32.totalorder %s1452_s16, 0 }
  0x54   : > { %1381 = dma.done.wait (%p1719_p11), [#allocation6], 6144   ;;  %p1720_p1 = pmov %p1719_p11 }
  0x55   : > { %v1408_v0 = vmov 0.0   ;;  %vm1409_vm0 = vmmov 0   ;;  %v1232_v1 = vld [vmem:[#allocation5] sm:$0xff]   ;;  %v1233_v2 = vld [vmem:[#allocation5 + $0x8] sm:$0xff]   ;;  %vm226_vm1 = vcmask 261120   ;;  %v1236_v6 = vld [vmem:[#allocation5 + $0x50] sm:$0xff]  }
  0x56   : > { %1383 = vsyncadd (%p1720_p1), [#allocation6], 4294961152  ;;  %1063 = vmatprep.subr.bf16.mxu0 %v1408_v0  ;;  %1067 = vmatprep.mubr.msk.bf16.mxu0 %vm1409_vm0, %v1408_v0  ;;  %v1234_v3 = vld [vmem:[#allocation5 + $0x40] sm:$0xff]   ;;  %v1235_v4 = vld [vmem:[#allocation5 + $0x48] sm:$0xff]   ;;  %s1012_s29 = sshll.u32 %s1452_s16, 6  ;;  %s200_s23 = scalar_lea.vmem [#allocation7], %s954_s22 }
  0x57   : > { %1071 = vmatprep.subr.bf16.mxu1 %v1408_v0  ;;  %1087 = vmatprep.mubr.msk.bf16.mxu1 %vm1409_vm0, %v1408_v0  ;;  %v202_v5 = vld [vmem:[%s174_s7] sm:$0xf]  ;;  %v1238_v8 = vld [vmem:[#allocation5 + $0x60] sm:$0xff]   ;;  %v1239_v9 = vld [vmem:[#allocation5 + $0x68] sm:$0xff]   ;;  %s867_s6 = sshll.u32 %s200_s23, 4  ;;  %vm851_vm2 = vcmask 125952   ;;  %s1659_s20 = scalar_lea.hbm %s1706_s3, %s1012_s29  ;;  %s1661_s6 = int_to_ptr.vmem [resolvable:$true] %s867_s6 }
  0x58   : > { %1064 = vmatpush3.bf16.msra.mxu0 %v1232_v1  ;;  %1072 = vmatpush3.bf16.msra.mxu1 %v1234_v3  ;;  %v1237_v7 = vld [vmem:[#allocation5 + $0x58] sm:$0xff]   ;;  %v1240_v10 = vld [vmem:[#allocation5 + $0x70] sm:$0xff]   ;;  %v1242_v12 = vld [vmem:[#allocation5 + $0x80] sm:$0xff]   ;;  %s854_s16 = scalar_lea.sflag [#allocation4], %s1567_s30  ;;  %s1332_s22 = scalar_lea.vmem %s1661_s6, 64 }
  0x59   : > { %1065 = vmatprep.subr.bf16.mxu0 %v1408_v0  ;;  %1073 = vmatprep.subr.bf16.mxu1 %v1408_v0  ;;  %v1241_v11 = vld [vmem:[#allocation5 + $0x78] sm:$0xff]   ;;  %v1243_v13 = vld [vmem:[#allocation5 + $0x88] sm:$0xff]   ;;  %v1244_v14 = vld [vmem:[#allocation5 + $0x90] sm:$0xff]   ;;  %p1333_p4 = scmp.ne.s32.totalorder %s1661_s6, %s1332_s22  ;;  %s1410_s4 = smov [#allocation7]  }
  0x5a   : > { %v1245_v15 = vld [vmem:[#allocation5 + $0x98] sm:$0xff]   ;;  %v1246_v16 = vld [vmem:[#allocation5 + $0xa0] sm:$0xff]   ;;  %v1247_v17 = vld [vmem:[#allocation5 + $0xa8] sm:$0xff]   ;;  %s1336_s25 = sshll.u32 %s1410_s4, 4  ;;  %s1337_s25 = int_to_ptr.vmem [resolvable:$false] %s1336_s25 }
  0x5b   : > { %v957_v18 = vld [vmem:[%s1705_s2] ss:$0 sm:$0xff]  ;;  %v1248_v27 = vld [vmem:[#allocation5 + $0xb0] sm:$0xff]   ;;  %v1250_v29 = vld [vmem:[#allocation5 + $0xc0] sm:$0xff]   ;;  %p1334_p6 = pnand %p1333_p4, %p1522_p12  ;;  %s1338_s26 = scalar_lea.vmem %s1337_s25, 128 }
  0x5c   : > { %1066 = vmatpush3.bf16.msra.mxu0 %v1233_v2  ;;  %1074 = vmatpush3.bf16.msra.mxu1 %v1235_v4  ;;  %v1249_v28 = vld [vmem:[#allocation5 + $0xb8] sm:$0xff]   ;;  %v1251_v30 = vld [vmem:[#allocation5 + $0xc8] sm:$0xff]   ;;  %v1252_v31 = vld [vmem:[#allocation5 + $0xd0] sm:$0xff]   ;;  %p1339_p10 = scmp.lt.s32.totalorder %s1661_s6, %s1337_s25  ;;  %p1340_p13 = scmp.lt.s32.totalorder %s1338_s26, %s1332_s22 }
  0x5d   : > { %1091 = vmatprep.subr.bf16.mxu0 %v1408_v0  ;;  %1075 = vmatprep.subr.bf16.mxu1 %v1408_v0  ;;  %v1253_v32 = vld [vmem:[#allocation5 + $0xd8] sm:$0xff]   ;;  %v1254_v33 = vld [vmem:[#allocation5 + $0xe0] sm:$0xff]   ;;  %v1255_v34 = vld [vmem:[#allocation5 + $0xe8] sm:$0xff]   ;;  %p1335_p8 = pneg %p1334_p6 }
  0x5e   : > { %v962_v35 = vld [vmem:[%s1705_s2 + $0x1] ss:$0 sm:$0xff]  ;;  %v1256_v44 = vld [vmem:[#allocation5 + $0xf0] sm:$0xff]   ;;  %v1258_v46 = vld [vmem:[#allocation5 + $0x100] sm:$0xff]   ;;  %p1341_p3 = por %p1340_p13, %p1339_p10 }
  0x5f   : > { %1068 = vmatmul.mubr.msk.bf16.vlgmr.msra.gmra.mrb[0].mxu0 %vm226_vm1, %v202_v5  ;;  %v1257_v45 = vld [vmem:[#allocation5 + $0xf8] sm:$0xff]   ;;  %v1259_v47 = vld [vmem:[#allocation5 + $0x108] sm:$0xff]   ;;  %v1260_v48 = vld [vmem:[#allocation5 + $0x110] sm:$0xff]  }
  0x60   : > { %1107 = vmatprep.mubr.msk.bf16.mxu0 %vm1409_vm0, %v1408_v0  ;;  %1076 = vmatpush3.bf16.msra.mxu1 %v1236_v6  ;;  %v1261_v49 = vld [vmem:[#allocation5 + $0x118] sm:$0xff]   ;;  %v1262_v50 = vld [vmem:[#allocation5 + $0x120] sm:$0xff]   ;;  %v1263_v51 = vld [vmem:[#allocation5 + $0x128] sm:$0xff]   ;;  %p1342_p7 = pnand %p1341_p3, %p1335_p8 }
  0x61   : > { %1077 = vmatprep.subr.bf16.mxu1 %v1408_v0  ;;  %1092 = vmatpush3.bf16.msra.mxu0 %v1242_v12  ;;  %v972_v52 = vld [vmem:[%s1705_s2 + $0x2] ss:$0 sm:$0xff]  ;;  %v1264_v61 = vld [vmem:[#allocation5 + $0x130] sm:$0xff]   ;;  %v1266_v63 = vld [vmem:[#allocation5 + $0x140] sm:$0xff]  }
  0x62   : > { %1093 = vmatprep.subr.bf16.mxu0 %v1408_v0  ;;  %v1265_v62 = vld [vmem:[#allocation5 + $0x138] sm:$0xff]   ;;  %v1267_v1 = vld [vmem:[#allocation5 + $0x148] sm:$0xff]   ;;  %v1268_v2 = vld [vmem:[#allocation5 + $0x150] sm:$0xff]  }
  0x63   : > { %v1269_v3 = vld [vmem:[#allocation5 + $0x158] sm:$0xff]   ;;  %v1270_v4 = vld [vmem:[#allocation5 + $0x160] sm:$0xff]   ;;  %v1271_v5 = vld [vmem:[#allocation5 + $0x168] sm:$0xff]  }
  0x64   : > { %1078 = vmatpush3.bf16.msra.mxu1 %v1237_v7  ;;  %v982_v6 = vld [vmem:[%s1705_s2 + $0x3] ss:$0 sm:$0xff] }
  0x65   : > { %1079 = vmatprep.subr.bf16.mxu1 %v1408_v0  ;;  %1094 = vmatpush3.bf16.msra.mxu0 %v1243_v13 }
  0x66   : > { %1095 = vmatprep.subr.bf16.mxu0 %v1408_v0 }
  0x68   : > { %1080 = vmatpush3.bf16.msra.mxu1 %v1238_v8 }
  0x69   : > { %1081 = vmatprep.subr.bf16.mxu1 %v1408_v0  ;;  %1096 = vmatpush3.bf16.msra.mxu0 %v1244_v14 }
  0x6a   : > { %1097 = vmatprep.subr.bf16.mxu0 %v1408_v0 }
  0x6c   : > { %1082 = vmatpush3.bf16.msra.mxu1 %v1239_v9 }
  0x6d   : > { %1083 = vmatprep.subr.bf16.mxu1 %v1408_v0  ;;  %1098 = vmatpush3.bf16.msra.mxu0 %v1245_v15  ;;  %v1272_v15 = vld [vmem:[#allocation5 + $0x170] sm:$0xff]  }
  0x6e   : > { %1099 = vmatprep.subr.bf16.mxu0 %v1408_v0 }
  0x70   : > { %1084 = vmatpush3.bf16.msra.mxu1 %v1240_v10 }
  0x71   : > { %1085 = vmatprep.subr.bf16.mxu1 %v1408_v0  ;;  %1100 = vmatpush3.bf16.msra.mxu0 %v1246_v16  ;;  %v1273_v16 = vld [vmem:[#allocation5 + $0x178] sm:$0xff]  }
  0x72   : > { %1101 = vmatprep.subr.bf16.mxu0 %v1408_v0 }
  0x74   : > { %1086 = vmatpush3.bf16.msra.mxu1 %v1241_v11 }
  0x75   : > { %1111 = vmatprep.subr.bf16.mxu1 %v1408_v0  ;;  %1102 = vmatpush3.bf16.msra.mxu0 %v1247_v17  ;;  %v992_v17 = vld [vmem:[%s1705_s2 + $0x4] ss:$0 sm:$0xff] }
  0x76   : > { %1103 = vmatprep.subr.bf16.mxu0 %v1408_v0 }
  0x79   : > { %1104 = vmatpush3.bf16.msra.mxu0 %v1248_v27 }
  0x7a   : > { %1105 = vmatprep.subr.bf16.mxu0 %v1408_v0 }
  0x7d   : > { %1106 = vmatpush3.bf16.msra.mxu0 %v1249_v28 }
  0x7e   : > { %1131 = vmatprep.subr.bf16.mxu0 %v1408_v0 }
 0x132   : > { %v264_v19 = vpop.f32.mrb[0].mxu0 }
 0x133   : > { %v265_v20 = vadd.f32 %v957_v18, %v264_v19  ;;  %v1069_v21 = vpop.f32.mrb[1].mxu0 }
 0x134   : > { %v267_v22 = vpop.f32.mrb[2].mxu0 }
 0x135   : > { %v270_v23 = vmul.f32 0.01, %v265_v20  ;;  %v1070_v24 = vpop.f32.mrb[3].mxu0 }
 0x137   : > { %v271_v25 = vmax.f32 %v265_v20, %v270_v23 }
 0x139   : > { %v272_v26 = vpack.c.bf16 %v271_v25, %v271_v25 }
 0x13b   : > { %1088 = vmatmul.mubr.bf16.vlgmr.msra.gmra.mrb[0].mxu1 %v272_v26 }
 0x13c   : > { %1127 = vmatprep.mubr.msk.bf16.mxu1 %vm1409_vm0, %v1408_v0  ;;  %1112 = vmatpush3.bf16.msra.mxu1 %v1250_v29 }
 0x13d   : > { %1113 = vmatprep.subr.bf16.mxu1 %v1408_v0 }
 0x140   : > { %1114 = vmatpush3.bf16.msra.mxu1 %v1251_v30 }
 0x141   : > { %1115 = vmatprep.subr.bf16.mxu1 %v1408_v0 }
 0x144   : > { %1116 = vmatpush3.bf16.msra.mxu1 %v1252_v31 }
 0x145   : > { %1117 = vmatprep.subr.bf16.mxu1 %v1408_v0 }
 0x148   : > { %1118 = vmatpush3.bf16.msra.mxu1 %v1253_v32 }
 0x149   : > { %1119 = vmatprep.subr.bf16.mxu1 %v1408_v0 }
 0x14c   : > { %1120 = vmatpush3.bf16.msra.mxu1 %v1254_v33 }
 0x14d   : > { %1121 = vmatprep.subr.bf16.mxu1 %v1408_v0 }
 0x150   : > { %1122 = vmatpush3.bf16.msra.mxu1 %v1255_v34 }
 0x151   : > { %1123 = vmatprep.subr.bf16.mxu1 %v1408_v0 }
 0x154   : > { %1124 = vmatpush3.bf16.msra.mxu1 %v1256_v44 }
 0x155   : > { %1125 = vmatprep.subr.bf16.mxu1 %v1408_v0 }
 0x158   : > { %1126 = vmatpush3.bf16.msra.mxu1 %v1257_v45 }
 0x159   : > { %1151 = vmatprep.subr.bf16.mxu1 %v1408_v0 }
 0x20e   : > { %v380_v36 = vpop.f32.mrb[0].mxu1 }
 0x20f   : > { %v381_v37 = vadd.f32 %v962_v35, %v380_v36  ;;  %v1089_v38 = vpop.f32.mrb[1].mxu1 }
 0x210   : > { %v383_v39 = vpop.f32.mrb[2].mxu1 }
 0x211   : > { %v386_v40 = vmul.f32 0.01, %v381_v37  ;;  %v1090_v41 = vpop.f32.mrb[3].mxu1 }
 0x213   : > { %v387_v42 = vmax.f32 %v381_v37, %v386_v40 }
 0x215   : > { %v388_v43 = vpack.c.bf16 %v387_v42, %v387_v42 }
 0x217   : > { %1108 = vmatmul.mubr.bf16.vlgmr.msra.gmra.mrb[4].mxu0 %v388_v43 }
 0x218   : > { %1147 = vmatprep.mubr.msk.bf16.mxu0 %vm1409_vm0, %v1408_v0  ;;  %1132 = vmatpush3.bf16.msra.mxu0 %v1258_v46 }
 0x219   : > { %1133 = vmatprep.subr.bf16.mxu0 %v1408_v0 }
 0x21c   : > { %1134 = vmatpush3.bf16.msra.mxu0 %v1259_v47 }
 0x21d   : > { %1135 = vmatprep.subr.bf16.mxu0 %v1408_v0 }
 0x220   : > { %1136 = vmatpush3.bf16.msra.mxu0 %v1260_v48 }
 0x221   : > { %1137 = vmatprep.subr.bf16.mxu0 %v1408_v0 }
 0x224   : > { %1138 = vmatpush3.bf16.msra.mxu0 %v1261_v49 }
 0x225   : > { %1139 = vmatprep.subr.bf16.mxu0 %v1408_v0 }
 0x228   : > { %1140 = vmatpush3.bf16.msra.mxu0 %v1262_v50 }
 0x229   : > { %1141 = vmatprep.subr.bf16.mxu0 %v1408_v0 }
 0x22c   : > { %1142 = vmatpush3.bf16.msra.mxu0 %v1263_v51 }
 0x22d   : > { %1143 = vmatprep.subr.bf16.mxu0 %v1408_v0 }
 0x230   : > { %1144 = vmatpush3.bf16.msra.mxu0 %v1264_v61 }
 0x231   : > { %1145 = vmatprep.subr.bf16.mxu0 %v1408_v0 }
 0x234   : > { %1146 = vmatpush3.bf16.msra.mxu0 %v1265_v62 }
 0x2ea   : > { %v496_v53 = vpop.f32.mrb[4].mxu0 }
 0x2eb   : > { %v497_v54 = vadd.f32 %v972_v52, %v496_v53  ;;  %v1109_v55 = vpop.f32.mrb[5].mxu0 }
 0x2ec   : > { %v499_v56 = vpop.f32.mrb[6].mxu0 }
 0x2ed   : > { %v502_v57 = vmul.f32 0.01, %v497_v54  ;;  %v1110_v58 = vpop.f32.mrb[7].mxu0 }
 0x2ef   : > { %v503_v59 = vmax.f32 %v497_v54, %v502_v57 }
 0x2f1   : > { %v504_v60 = vpack.c.bf16 %v503_v59, %v503_v59 }
 0x2f3   : > { %1128 = vmatmul.mubr.bf16.vlgmr.msra.gmra.mrb[4].mxu1 %v504_v60 }
 0x2f4   : > { %1167 = vmatprep.mubr.msk.bf16.mxu1 %vm1409_vm0, %v1408_v0  ;;  %1152 = vmatpush3.bf16.msra.mxu1 %v1266_v63 }
 0x2f5   : > { %1153 = vmatprep.subr.bf16.mxu1 %v1408_v0 }
 0x2f8   : > { %1154 = vmatpush3.bf16.msra.mxu1 %v1267_v1 }
 0x2f9   : > { %1155 = vmatprep.subr.bf16.mxu1 %v1408_v0 }
 0x2fc   : > { %1156 = vmatpush3.bf16.msra.mxu1 %v1268_v2 }
 0x2fd   : > { %1157 = vmatprep.subr.bf16.mxu1 %v1408_v0 }
 0x300   : > { %1158 = vmatpush3.bf16.msra.mxu1 %v1269_v3 }
 0x301   : > { %1159 = vmatprep.subr.bf16.mxu1 %v1408_v0 }
 0x304   : > { %1160 = vmatpush3.bf16.msra.mxu1 %v1270_v4 }
 0x305   : > { %1161 = vmatprep.subr.bf16.mxu1 %v1408_v0 }
 0x308   : > { %1162 = vmatpush3.bf16.msra.mxu1 %v1271_v5 }
 0x309   : > { %1163 = vmatprep.subr.bf16.mxu1 %v1408_v0 }
 0x30c   : > { %1164 = vmatpush3.bf16.msra.mxu1 %v1272_v15 }
 0x30d   : > { %1165 = vmatprep.subr.bf16.mxu1 %v1408_v0  ;;  %v1002_v0 = vld [vmem:[%s1705_s2 + $0x5] ss:$0 sm:$0xff] }
 0x310   : > { %1166 = vmatpush3.bf16.msra.mxu1 %v1273_v16 }
 0x3c6   : > { %v612_v7 = vpop.f32.mrb[4].mxu1 }
 0x3c7   : > { %v613_v8 = vadd.f32 %v982_v6, %v612_v7  ;;  %v1129_v9 = vpop.f32.mrb[5].mxu1 }
 0x3c8   : > { %v615_v10 = vpop.f32.mrb[6].mxu1 }
 0x3c9   : > { %v618_v11 = vmul.f32 0.01, %v613_v8  ;;  %v1130_v12 = vpop.f32.mrb[7].mxu1 }
 0x3cb   : > { %v619_v13 = vmax.f32 %v613_v8, %v618_v11 }
 0x3cd   : > { %v620_v14 = vpack.c.bf16 %v619_v13, %v619_v13 }
 0x3cf   : > { %1148 = vmatmul.mubr.bf16.vlgmr.msra.gmra.mrb[8].mxu0 %v620_v14 }
 0x4a2   : > { %v728_v18 = vpop.f32.mrb[8].mxu0 }
 0x4a3   : > { %v729_v19 = vadd.f32 %v992_v17, %v728_v18  ;;  %v1149_v20 = vpop.f32.mrb[9].mxu0 }
 0x4a4   : > { %v731_v21 = vpop.f32.mrb[10].mxu0 }
 0x4a5   : > { %v734_v22 = vmul.f32 0.01, %v729_v19  ;;  %v1150_v23 = vpop.f32.mrb[11].mxu0 }
 0x4a7   : > { %v735_v24 = vmax.f32 %v729_v19, %v734_v22 }
 0x4a9   : > { %v736_v25 = vpack.c.bf16 %v735_v24, %v735_v24 }
 0x4ab   : > { %1168 = vmatmul.mubr.bf16.vlgmr.msra.gmra.mrb[8].mxu1 %v736_v25 }
 0x57e   : > { %v844_v26 = vpop.f32.mrb[8].mxu1 }
 0x57f   : > { %v845_v27 = vadd.f32 %v1002_v0, %v844_v26  ;;  %v1169_v28 = vpop.f32.mrb[9].mxu1 }
 0x580   : > { %v847_v29 = vpop.f32.mrb[10].mxu1 }
 0x581   : > { %v850_v30 = vpack.c.bf16 %v845_v27, %v845_v27  ;;  %v1170_v31 = vpop.f32.mrb[11].mxu1 }
 0x583   : > { %852 = vst.msk [vmem:[%s200_s23] sm:$0xf] %vm851_vm2, %v850_v30 }
 0x584   : > { %1345 = shalt.err (!%p1342_p7)
}
 0x585   : > { %s1346_s30 = scalar_lea.hbm %s1659_s20, 64  ;;  %s1350_s9 = scalar_lea.hbm %s1706_s3, 128 }
 0x586   : > { %p1347_p9 = scmp.ne.s32.totalorder %s1659_s20, %s1346_s30  ;;  %p1351_p0 = scmp.lt.u32.totalorder %s1659_s20, %s1706_s3 }
 0x587   : > { %p1352_p11 = scmp.lt.u32.totalorder %s1350_s9, %s1346_s30  ;;  %p1354_p4 = scmp.lt.u32.totalorder %s1346_s30, %s1659_s20 }
 0x588   : > { %p1348_p2 = pnand %p1347_p9, %p1522_p12 }
 0x589   : > { %p1353_p1 = por %p1352_p11, %p1351_p0 }
 0x58a   : > { %p1349_p5 = pneg %p1348_p2 }
 0x58b   : > { %p1355_p6 = por %p1354_p4, %p1353_p1 }
 0x58d   : > { %p1356_p8 = pnand %p1355_p6, %p1349_p5 }
 0x58f   : > { %1359 = shalt.err (!%p1356_p8)
}
 0x590   : > { %1177 = dma.vmem_to_hbm [thread:$0]  (%p1522_p12), %s1661_s6, 64, %s1659_s20, %s854_s16  }
 0x591 PF: > { %s879_s27 = sand.u32 1, %s1390_s12   ;;  %p1721_p10 = scmp.ne.s32.totalorder %s1711_s19, 0 }
 0x592   : > { %p1722_p13 = scmp.ge.s32.totalorder %s1402_s15, 2  ;;  %s880_s28 = scalar_lea.sflag [#allocation4], %s879_s27 }
 0x594   : > { %p1188_p3 = pnand %p1722_p13, %p1721_p10 }
 0x596   : > { %1385 = dma.done.wait (!%p1188_p3), %s880_s28, 64  }
 0x597   : > { %1387 = vsyncadd (!%p1188_p3), %s880_s28, 4294967232  ;;  %p17_p7 = scmp.ge.s32.totalorder %s1487_s24, 4   ;;  %s1723_s12 = smov %s1394_s13 }
 0x598   : > { %s1724_s13 = smov %s1398_s14  ;;  %s1725_s14 = smov %s1518_s17 }
 0x599   : > { %s1726_s15 = smov %s1487_s24  ;;  %19 = sbr.rel (!%p17_p7) target bundleno = 6 (0x6), region = 91 }
 0x5a0   :  { %885 = vsyncpa [#allocation3], 1 }
 0x5a1   :  { %887 = vsyncpa [#allocation3 + $0x1], 1 }
 0x5a2   :  { %888 = vsyncpa [#allocation6], 1 }
 0x5a3   :  { %889 = vsyncpa [#allocation4], 1 }
 0x5a4   :  { %891 = vsyncpa [#allocation4 + $0x1], 1 }

</bundles_post_ra>
